<compile_context>
chip_gen: v7x
topology: tpu7x:2x2x1
jax: 0.10.0
libtpu: 0.0.40
codegen_flags: <defaults>
</compile_context>

<pallas_src>
import functools

import jax
import jax.numpy as jnp
from jax.experimental import pallas as pl
from jax.experimental.pallas import tpu as pltpu


# ----------------------------------------------------------------------------
# Generation-aware compiler params (review item #6)
# ----------------------------------------------------------------------------
def _pick_vmem_limit_bytes():
    """~3/4 of physical VMEM, capped at 96 MiB (v5e/v6e: 128 MiB -> 96 MiB;
    v7x: 64 MiB -> 48 MiB).  Safe 48 MiB fallback if the query fails."""
    try:
        cap = int(pltpu.get_tpu_info().vmem_capacity_bytes)
        return int(min(cap * 3 // 4, 96 * 1024 * 1024))
    except Exception:
        return 48 * 1024 * 1024


_COMPILER_PARAMS = pltpu.CompilerParams(
    dimension_semantics=("parallel",),      # batch tiles shard across v7x TCs
    vmem_limit_bytes=_pick_vmem_limit_bytes(),
)


def _round_up(x, m):
    return ((x + m - 1) // m) * m


def _batch_tile(B, block_b):
    """Pick the batch tile: as large as block_b allows, but always >= 2 grid
    steps (review item #2, feeds both v7x TensorCores) and 8-row aligned."""
    tb = min(block_b, B)
    if B > 8:
        tb = min(tb, _round_up(pl.cdiv(B, 2), 8))
    if tb < B:
        tb = _round_up(tb, 8)               # keep second-minor dim 8-aligned
    return max(tb, 1)


def _resident_spec(shape):
    """(0,0)-indexed VMEM-resident operand; single-buffered (review item #5)
    so large C/D weights don't pay 2x VMEM for double buffering."""
    kwargs = {}
    if hasattr(pl, "Buffered"):
        kwargs["pipeline_mode"] = pl.Buffered(1)
    try:
        return pl.BlockSpec(shape, lambda i: (0, 0), **kwargs)
    except TypeError:                       # older API without pipeline_mode
        return pl.BlockSpec(shape, lambda i: (0, 0))


# ----------------------------------------------------------------------------
# Kernel bodies
# ----------------------------------------------------------------------------
def _affine_core(d, z_ref, ctx_ref, w_ref, b_ref):
    """Fused bf16 MXU matmul (tb, C) @ (C, 2D) -> f32 (tb, 2D); affine in f32."""
    ctx = ctx_ref[...].astype(jnp.bfloat16)          # no-op if already bf16 (#9)
    st = jnp.dot(ctx, w_ref[...], preferred_element_type=jnp.float32) + b_ref[...]
    s = st[:, :d]          # free vreg selection when d % 128 == 0 (#4)
    t = st[:, d:]
    x = z_ref[...] * jnp.exp(s) + t                  # VPU + EUP, f32
    return x, s


def _fwd_kernel(d, z_ref, ctx_ref, w_ref, b_ref, x_ref):
    """forward(): log-det is discarded, so don't compute/store it at all."""
    x, _ = _affine_core(d, z_ref, ctx_ref, w_ref, b_ref)
    x_ref[...] = x.astype(x_ref.dtype)


def _fwd_logdet_kernel(d, z_ref, ctx_ref, w_ref, b_ref, x_ref, ljd_ref):
    x, s = _affine_core(d, z_ref, ctx_ref, w_ref, b_ref)
    x_ref[...] = x.astype(x_ref.dtype)
    # Review item #1: in-kernel lane reduction (XLU slot is idle) to a (tb, 1)
    # output -> no (B, 128) partial slab, no second XLA reduction pass.
    ljd_ref[...] = jnp.sum(s, axis=-1, keepdims=True)


# ----------------------------------------------------------------------------
# pallas_call wrappers
# ----------------------------------------------------------------------------
def _streamed_specs(C, D, tb):
    return [
        pl.BlockSpec((tb, D), lambda i: (i, 0)),     # z        (streamed)
        pl.BlockSpec((tb, C), lambda i: (i, 0)),     # context  (streamed)
        _resident_spec((C, 2 * D)),                  # [W_s|W_t] bf16, resident
        _resident_spec((1, 2 * D)),                  # [b_s|b_t] f32,  resident
    ]


def _cost(B, C, D, ctx_itemsize, with_ljd):
    flops = 2 * B * C * (2 * D) + 4 * B * D
    bytes_accessed = (4 * 2 * B * D                  # z, x (f32)
                      + ctx_itemsize * B * C         # context (f32 or bf16)
                      + 2 * C * 2 * D                # fused bf16 weights
                      + 4 * 2 * D                    # fused f32 bias
                      + (4 * B if with_ljd else 0))  # (B, 1) log-det
    return pl.CostEstimate(flops=flops, transcendentals=B * D,
                           bytes_accessed=bytes_accessed)


@functools.partial(jax.jit, static_argnames=("block_b",))
def cond_affine_forward(z, context, w_st, b_st, *, block_b=1024):
    """z: (B, D) f32, context: (B, C) f32/bf16 -> x: (B, D). No log-det."""
    B, D = z.shape
    C = context.shape[1]
    tb = _batch_tile(B, block_b)
    return pl.pallas_call(
        functools.partial(_fwd_kernel, D),
        out_shape=jax.ShapeDtypeStruct((B, D), z.dtype),
        grid=(pl.cdiv(B, tb),),
        in_specs=_streamed_specs(C, D, tb),
        out_specs=pl.BlockSpec((tb, D), lambda i: (i, 0)),
        compiler_params=_COMPILER_PARAMS,
        cost_estimate=_cost(B, C, D, context.dtype.itemsize, False),
    )(z, context, w_st, b_st)


@functools.partial(jax.jit, static_argnames=("block_b",))
def cond_affine_forward_and_log_det(z, context, w_st, b_st, *, block_b=1024):
    """Returns x: (B, D) and log|det J|: (B,)."""
    B, D = z.shape
    C = context.shape[1]
    tb = _batch_tile(B, block_b)
    x, ljd = pl.pallas_call(
        functools.partial(_fwd_logdet_kernel, D),
        out_shape=(
            jax.ShapeDtypeStruct((B, D), z.dtype),
            jax.ShapeDtypeStruct((B, 1), jnp.float32),
        ),
        grid=(pl.cdiv(B, tb),),
        in_specs=_streamed_specs(C, D, tb),
        out_specs=(
            pl.BlockSpec((tb, D), lambda i: (i, 0)),
            pl.BlockSpec((tb, 1), lambda i: (i, 0)),
        ),
        compiler_params=_COMPILER_PARAMS,
        cost_estimate=_cost(B, C, D, context.dtype.itemsize, True),
    )(z, context, w_st, b_st)
    return x, jnp.squeeze(ljd, axis=-1)              # shape-only, no reduction


# ----------------------------------------------------------------------------
# Minimal UniformGaussian base distribution (all-Gaussian variant), JAX glue.
# ----------------------------------------------------------------------------
class UniformGaussian:
    def __init__(self, ndim):
        self.ndim = ndim

    def __call__(self, num_samples, key=None):
        if key is None:
            key = jax.random.PRNGKey(1)
        z = jax.random.normal(key, (num_samples, self.ndim), dtype=jnp.float32)
        return z, self.log_prob(z)

    def log_prob(self, z):
        return jnp.sum(-0.5 * jnp.log(2.0 * jnp.pi) - 0.5 * z * z, axis=-1)


# ----------------------------------------------------------------------------
# ConditionalFlowBase mirror (hot path runs the Pallas kernels)
# ----------------------------------------------------------------------------
class ConditionalFlowBase:
    def __init__(self, q0: UniformGaussian, context_dim, latent_dim, key,
                 block_b=1024):
        self.q0 = q0
        self.latent_dim = latent_dim
        self.block_b = block_b
        k1, k2 = jax.random.split(key)
        w_s = 0.05 * jax.random.normal(k1, (context_dim, latent_dim),
                                       dtype=jnp.float32)
        w_t = 0.05 * jax.random.normal(k2, (context_dim, latent_dim),
                                       dtype=jnp.float32)
        # Review items #4 + #8: weights fused to (C, 2D) and pre-cast to bf16
        # ONCE here, so the jitted wrappers don't re-cast every call.
        # (For latent_dim % 128 != 0 the in-kernel slice crosses a lane tile;
        #  still correct, just a minor copy.)
        self.w_st = jnp.concatenate([w_s, w_t], axis=1).astype(jnp.bfloat16)
        self.b_st = jnp.zeros((1, 2 * latent_dim), dtype=jnp.float32)

    # --- concrete realization of the abstract hot path ----------------------
    def forward_and_log_det(self, z, context=None):
        return cond_affine_forward_and_log_det(
            z, context, self.w_st, self.b_st, block_b=self.block_b)

    def inverse_and_log_det(self, x_int, context=None):
        # analytic inverse of the affine map (plain JAX glue; same bf16 path)
        d = self.latent_dim
        ctx = context.astype(jnp.bfloat16)
        st = jnp.dot(ctx, self.w_st,
                     preferred_element_type=jnp.float32) + self.b_st
        s, t = st[:, :d], st[:, d:]
        z = (x_int - t) * jnp.exp(-s)
        return z, -jnp.sum(s, axis=-1)

    # --- base-class API ------------------------------------------------------
    def forward(self, z, context=None):
        # log-det is discarded -> use the log-det-free kernel (no reduce/store)
        return cond_affine_forward(
            z, context, self.w_st, self.b_st, block_b=self.block_b)

    def inverse(self, x_int, context=None):
        z, _ = self.inverse_and_log_det(x_int, context=context)
        return z

    def sample(self, num_samples=1, context=None):
        z, log_q = self.q0(num_samples)
        x_int, log_trafo = self.forward_and_log_det(z, context=context)
        return x_int, log_q - log_trafo

    def log_prob(self, x_int, context=None):
        z, log_trafo = self.inverse_and_log_det(x_int, context=context)
        return self.q0.log_prob(z) + log_trafo

    def forward_kld(self, x_int, context=None):
        return -jnp.mean(self.log_prob(x_int, context=context))

    # TODO(synk): save()/load() (torch state_dict I/O) have no Pallas equivalent.


# ----------------------------------------------------------------------------
if __name__ == "__main__":
    # Tile-friendly example shapes.  With the default block_b=1024 the batch
    # tile is capped at ceil(B/2)=256 -> 2 grid steps, so the batch-streamed
    # pipeline, the resident-weight path and megacore sharding are exercised.
    B, D, C = 512, 128, 128

    key = jax.random.PRNGKey(0)
    kz, kc, kp = jax.random.split(key, 3)

    z = jax.random.normal(kz, (B, D), dtype=jnp.float32)
    context = jax.random.normal(kc, (B, C), dtype=jnp.float32)

    flow = ConditionalFlowBase(UniformGaussian(D), C, D, kp)

    # forward (log-det-free kernel)
    x = flow.forward(z, context=context)
    x = jax.block_until_ready(x)

    # reference in plain JAX, using the same fused bf16 MXU path as the kernel
    st_ref = jnp.dot(context.astype(jnp.bfloat16), flow.w_st,
                     preferred_element_type=jnp.float32) + flow.b_st
    s_ref, t_ref = st_ref[:, :D], st_ref[:, D:]
    x_ref = z * jnp.exp(s_ref) + t_ref

    assert x.shape == (B, D)
    assert jnp.allclose(x, x_ref, atol=5e-3, rtol=5e-3), float(
        jnp.max(jnp.abs(x - x_ref)))

    # forward_and_log_det: (B, 1) log-det reduced in-kernel
    x2, ljd = flow.forward_and_log_det(z, context=context)
    jax.block_until_ready((x2, ljd))
    assert x2.shape == (B, D) and ljd.shape == (B,)
    assert jnp.allclose(x2, x_ref, atol=5e-3, rtol=5e-3)
    assert jnp.allclose(ljd, jnp.sum(s_ref, axis=-1), atol=1e-2, rtol=1e-3)

    # bf16 context end-to-end (review item #9): bit-identical to the f32 path
    x_bf = flow.forward(z, context=context.astype(jnp.bfloat16))
    x_bf = jax.block_until_ready(x_bf)
    assert jnp.allclose(x_bf, x_ref, atol=5e-3, rtol=5e-3)

    # exercise the base-class plumbing (sample / log_prob / forward_kld)
    xs, logp = flow.sample(num_samples=B, context=context)
    kld = flow.forward_kld(x_ref, context=context)
    jax.block_until_ready((xs, logp, kld))

    print("KERNEL_OK")
</pallas_src>

<mosaic_0001>
module attributes {stable_mosaic.version = 11 : i64} {
  func.func @_fwd_kernel(%arg0: i32, %arg1: memref<256x128xf32, #tpu.memory_space<vmem>>, %arg2: memref<256x128xf32, #tpu.memory_space<vmem>>, %arg3: memref<128x256xbf16, #tpu.memory_space<vmem>>, %arg4: memref<1x256xf32, #tpu.memory_space<vmem>>, %arg5: memref<256x128xf32, #tpu.memory_space<vmem>>) attributes {dimension_semantics = [#tpu.dimension_semantics<parallel>], iteration_bounds = array<i64: 2>, scalar_prefetch = 0 : i64, scratch_operands = 0 : i64, tpu.core_type = #tpu.core_type<tc>, window_params = [{transform_indices = @transform_0, window_bounds = array<i64: 256, 128>}, {transform_indices = @transform_1, window_bounds = array<i64: 256, 128>}, {pipeline_mode = #tpu.pipeline_mode<synchronous>, transform_indices = @transform_2, window_bounds = array<i64: 128, 256>}, {pipeline_mode = #tpu.pipeline_mode<synchronous>, transform_indices = @transform_3, window_bounds = array<i64: 1, 256>}, {transform_indices = @transform_4, window_bounds = array<i64: 256, 128>}]} {
    %c0 = arith.constant 0 : index
    %c0_0 = arith.constant 0 : index
    %0 = vector.load %arg2[%c0, %c0_0] : memref<256x128xf32, #tpu.memory_space<vmem>>, vector<256x128xf32>
    %1 = arith.truncf %0 : vector<256x128xf32> to vector<256x128xbf16>
    %c0_1 = arith.constant 0 : index
    %c0_2 = arith.constant 0 : index
    %2 = vector.load %arg3[%c0_1, %c0_2] : memref<128x256xbf16, #tpu.memory_space<vmem>>, vector<128x256xbf16>
    %cst = arith.constant dense<0.000000e+00> : vector<256x256xf32>
    %3 = tpu.matmul %1, %2, %cst {dimension_numbers = #tpu.dot_dimension_numbers<[1], [0], [0], [1], [0, 0, 1, 1], [], []>} : vector<256x128xbf16>, vector<128x256xbf16>, vector<256x256xf32> -> vector<256x256xf32>
    %c0_3 = arith.constant 0 : index
    %c0_4 = arith.constant 0 : index
    %4 = vector.load %arg4[%c0_3, %c0_4] : memref<1x256xf32, #tpu.memory_space<vmem>>, vector<1x256xf32>
    %5 = vector.broadcast %4 : vector<1x256xf32> to vector<256x256xf32>
    %6 = arith.addf %3, %5 : vector<256x256xf32>
    %7 = vector.extract_strided_slice %6 {offsets = [0, 0], sizes = [256, 128], strides = [1, 1]} : vector<256x256xf32> to vector<256x128xf32>
    %8 = vector.extract_strided_slice %6 {offsets = [0, 128], sizes = [256, 128], strides = [1, 1]} : vector<256x256xf32> to vector<256x128xf32>
    %c0_5 = arith.constant 0 : index
    %c0_6 = arith.constant 0 : index
    %9 = vector.load %arg1[%c0_5, %c0_6] : memref<256x128xf32, #tpu.memory_space<vmem>>, vector<256x128xf32>
    %10 = math.exp %7 : vector<256x128xf32>
    %11 = arith.mulf %9, %10 : vector<256x128xf32>
    %12 = arith.addf %11, %8 : vector<256x128xf32>
    %c0_7 = arith.constant 0 : index
    %c0_8 = arith.constant 0 : index
    %13 = vector.load %arg5[%c0_7, %c0_8] : memref<256x128xf32, #tpu.memory_space<vmem>>, vector<256x128xf32>
    tpu.vector_store %arg5[%c0_7, %c0_8], %12 {strides = array<i32>} : memref<256x128xf32, #tpu.memory_space<vmem>>, vector<256x128xf32>,
    return
  }
  func.func @transform_0(%arg0: i32) -> (i32, i32) {
    %c0_i32 = arith.constant 0 : i32
    %c0_i32_0 = arith.constant 0 : i32
    return %arg0, %c0_i32 : i32, i32
  }
  func.func @transform_1(%arg0: i32) -> (i32, i32) {
    %c0_i32 = arith.constant 0 : i32
    %c0_i32_0 = arith.constant 0 : i32
    return %arg0, %c0_i32 : i32, i32
  }
  func.func @transform_2(%arg0: i32) -> (i32, i32) {
    %c0_i32 = arith.constant 0 : i32
    %c0_i32_0 = arith.constant 0 : i32
    %c0_i32_1 = arith.constant 0 : i32
    return %c0_i32, %c0_i32_0 : i32, i32
  }
  func.func @transform_3(%arg0: i32) -> (i32, i32) {
    %c0_i32 = arith.constant 0 : i32
    %c0_i32_0 = arith.constant 0 : i32
    %c0_i32_1 = arith.constant 0 : i32
    return %c0_i32, %c0_i32_0 : i32, i32
  }
  func.func @transform_4(%arg0: i32) -> (i32, i32) {
    %c0_i32 = arith.constant 0 : i32
    %c0_i32_0 = arith.constant 0 : i32
    return %arg0, %c0_i32 : i32, i32
  }
}

</mosaic_0001>

<bundles_post_ra>
// kernel: cond_affine_forward.1
= control target key start
LH: loop header
LB: loop body
LE: loop exit
PB: predicated region body
PF: predicated region fallthrough
CT: control target
= control target key end

     0   :  { %s1862_s0 = inlined_call_operand.hbm [shape: f32[512,128], index: 0, kind: input, shape index: {}]   ;;  %s1863_s1 = inlined_call_operand.hbm [shape: f32[512,128], index: 1, kind: input, shape index: {}]   ;;  %s1864_s2 = inlined_call_operand.hbm [shape: bf16[128,256], index: 2, kind: input, shape index: {}]   ;;  %s1865_s3 = inlined_call_operand.vmem [shape: f32[1,256], index: 3, kind: input, shape index: {}]   ;;  %s1866_s4 = inlined_call_operand.hbm [shape: f32[512,128], index: 4, kind: output, shape index: {}]  }
   0x1   :  { %1874 = sst [smem:[#allocation14_spill]] %s1862_s0 }
   0x2   :  { %1875 = sst [smem:[#allocation15_spill]] %s1864_s2 }
   0x3   :  { %9 = vsyncpa [#allocation3], 0 }
   0x4   :  { %11 = vsyncpa [#allocation3 + $0x1], 0 }
   0x5   :  { %12 = vsyncpa [#allocation6], 0 }
   0x6   :  { %14 = vsyncpa [#allocation6 + $0x1], 0 }
   0x7   :  { %15 = vsyncpa [#allocation4], 0 }
   0x8   :  { %17 = vsyncpa [#allocation4 + $0x1], 0  ;;  %s1342_s15 = smov 0   ;;  %s1344_s16 = smov 0  }
   0x9   :  { %s1346_s17 = smov 0   ;;  %s1348_s18 = smov 0  }
   0xa LB: > { %s1363_s19 = sadd.s32 4294967295, %s1306_s18   ;;  %s934_s20 = sadd.s32 4294967294, %s1306_s18   ;;  %s1306_s18 = sphi %s1348_s18, %s1898_s18   ;;  %s1302_s17 = sphi %s1346_s17, %s1897_s17   ;;  %s1298_s16 = sphi %s1344_s16, %s1896_s16   ;;  %s1294_s15 = sphi %s1342_s15, %s1895_s15  }
   0xb   : > { %p43_p0 = scmp.ne.s32.totalorder %s1298_s16, %s1294_s15  ;;  %p1867_p1 = scmp.eq.s32.totalorder %s1363_s19, 0 }
   0xc   : > { %p141_p3 = scmp.eq.s32.totalorder %s934_s20, 1  ;;  %p935_p5 = scmp.ge.s32.totalorder %s1306_s18, 1 }
   0xd   : > { %p1372_p4 = por %p1867_p1, %p43_p0  ;;  %p148_p7 = scmp.lt.s32.totalorder %s1306_s18, 3 }
   0xe   : > { %p1377_p6 = por %p141_p3, %p43_p0  ;;  %s1308_s24 = smov [#allocation7]  }
   0xf   : > { %s1876_s21 = scalar_select %p1372_p4, 1, 0 }
  0x10   : > { %s1877_s22 = scalar_select %p1377_p6, 1, 0 }
  0x11   : > { %p1382_p8 = pnand %p935_p5, %p148_p7  ;;  %s160_s25 = sshll.u32 %s1308_s24, 4  ;;  %s1386_s25 = int_to_ptr.vmem [resolvable:$true] %s160_s25 }
  0x12   : > { %s1398_s27 = sadd.s32 1, %s1306_s18   ;;  %s30_s28 = sadd.s32 1, %s1302_s17 }
  0x13   : > { %s1878_s23 = scalar_select %p1382_p8, 1, 0 }
  0x14   : > { %p999_p9 = pneg %p1382_p8  ;;  %s27_s29 = ssub.s32 %s1306_s18, %s1398_s27 }
  0x15   : > { %s1880_s2 = sld [smem:[#allocation15_spill]] }
  0x16   : > { %p1393_p11 = pnand %p999_p9, %p1867_p1 }
  0x18   : > { %p1146_p13 = pneg %p1393_p11 }
  0x1b   : > { %s1144_s6 = scalar_lea.hbm %s1880_s2, 2048 }
  0x1c   : > { %p1145_p12 = scmp.ne.s32.totalorder %s1880_s2, %s1144_s6  ;;  %p1151_p5 = scmp.lt.u32.totalorder %s1144_s6, %s1880_s2 }
  0x1e   : > { %p1147_p0 = pnand %p1146_p13, %p1145_p12 }
  0x20   : > { %p1148_p3 = pneg %p1147_p0 }
  0x22   : > { %p1153_p7 = pnand %p1151_p5, %p1148_p3 }
  0x24   : > { %1156 = shalt.err (!%p1153_p7)
}
  0x25   : > { %s1157_s11 = scalar_lea.vmem %s1386_s25, 2048  ;;  %p1165_p2 = scmp.lt.s32.totalorder %s1386_s25, %s1386_s25 }
  0x26   : > { %p1158_p9 = scmp.ne.s32.totalorder %s1386_s25, %s1157_s11  ;;  %p1166_p6 = scmp.lt.s32.totalorder %s1157_s11, %s1157_s11 }
  0x28   : > { %p1160_p10 = pnand %p1158_p9, %p1146_p13  ;;  %p1167_p4 = por %p1166_p6, %p1165_p2 }
  0x2a   : > { %p1161_p1 = pneg %p1160_p10 }
  0x2c   : > { %p1168_p8 = pnand %p1167_p4, %p1161_p1 }
  0x2e   : > { %1171 = shalt.err (!%p1168_p8)
}
  0x2f   : > { %s1870_s12 = smov 128   ;;  %s1872_s13 = smov 8  }
  0x30   : > { %1002 = dma.hbm_to_vmem [thread:$0]  (!%p1393_p11), %s1880_s2, 2048, %s1386_s25, [#allocation6], %s1870_s12, %s1870_s12, %s1872_s13  }
  0x31   : > { %p28_p1 = scmp.eq.s32.totalorder %s27_s29, 0  ;;  %p37_p2 = scmp.ne.s32.totalorder %s1302_s17, %s1298_s16 }
  0x32   : > { %p38_p4 = scmp.eq.s32.totalorder %s1306_s18, 0  ;;  %p1015_p6 = scmp.lt.s32.totalorder %s1306_s18, 2 }
  0x33   : > { %s1432_s24 = scalar_select %p28_p1, %s1302_s17, %s30_s28  }
  0x34   : > { %p39_p8 = por %p38_p4, %p37_p2  ;;  %p1882_p10 = scmp.eq.s32.totalorder %s1363_s19, 1 }
  0x35   : > { %1881 = sst [smem:[#allocation13_spill]] %s1432_s24  ;;  %s177_s26 = sand.u32 1, %s1302_s17  }
  0x36   : > { %p1436_p12 = por %p1882_p10, %p37_p2  ;;  %s970_s5 = sshll.u32 %s1306_s18, 12 }
  0x37   : > { %s1442_s6 = sshll.u32 %s177_s26, 8  ;;  %s1884_s0 = sld [smem:[#allocation14_spill]] }
  0x38   : > { %s181_s28 = scalar_lea.vmem [#allocation2], %s1442_s6  ;;  %p1450_p11 = pnand %p1015_p6, %p39_p8 }
  0x39   : > { %s188_s29 = sshll.u32 %s181_s28, 4  ;;  %s1459_s14 = scalar_lea.hbm %s1863_s1, %s970_s5  ;;  %s1454_s29 = int_to_ptr.vmem [resolvable:$true] %s188_s29 }
  0x3a   : > { %s1461_s20 = scalar_lea.sflag [#allocation3], %s177_s26  ;;  %p1174_p0 = pneg %p1450_p11 }
  0x3d   : > { %s1447_s25 = scalar_lea.hbm %s1884_s0, %s970_s5  ;;  %s1177_s12 = scalar_lea.hbm %s1884_s0, 8192 }
  0x3e   : > { %s1172_s7 = scalar_lea.hbm %s1447_s25, 4096  ;;  %p1178_p7 = scmp.lt.u32.totalorder %s1447_s25, %s1884_s0 }
  0x3f   : > { %p1173_p13 = scmp.ne.s32.totalorder %s1447_s25, %s1172_s7  ;;  %p1179_p9 = scmp.lt.u32.totalorder %s1177_s12, %s1172_s7 }
  0x40   : > { %p1181_p2 = scmp.lt.u32.totalorder %s1172_s7, %s1447_s25 }
  0x41   : > { %p1175_p3 = pnand %p1174_p0, %p1173_p13  ;;  %p1180_p1 = por %p1179_p9, %p1178_p7 }
  0x43   : > { %p1176_p5 = pneg %p1175_p3  ;;  %p1182_p4 = por %p1181_p2, %p1180_p1 }
  0x45   : > { %p1183_p6 = pnand %p1182_p4, %p1176_p5 }
  0x47   : > { %1186 = shalt.err (!%p1183_p6)
}
  0x48   : > { %s1187_s26 = scalar_lea.vmem %s1454_s29, 4096  ;;  %s1311_s5 = smov [#allocation2]  }
  0x49   : > { %p1188_p8 = scmp.ne.s32.totalorder %s1454_s29, %s1187_s26  ;;  %s1192_s10 = sshll.u32 %s1311_s5, 4  ;;  %s1193_s10 = int_to_ptr.vmem [resolvable:$false] %s1192_s10 }
  0x4a   : > { %s1194_s2 = scalar_lea.vmem %s1193_s10, 8192  ;;  %p1195_p3 = scmp.lt.s32.totalorder %s1454_s29, %s1193_s10 }
  0x4b   : > { %p1190_p10 = pnand %p1188_p8, %p1174_p0  ;;  %p1196_p7 = scmp.lt.s32.totalorder %s1194_s2, %s1187_s26 }
  0x4d   : > { %p1191_p13 = pneg %p1190_p10  ;;  %p1197_p9 = por %p1196_p7, %p1195_p3 }
  0x4f   : > { %p1198_p1 = pnand %p1197_p9, %p1191_p13 }
  0x51   : > { %1201 = shalt.err (!%p1198_p1)
}
  0x52   : > { %s1886_s12 = smov 8   ;;  %s1887_s13 = smov 128  }
  0x53   : > { %1006 = dma.hbm_to_vmem [thread:$0]  (!%p1450_p11), %s1447_s25, 4096, %s1454_s29, %s1461_s20, %s1887_s13, %s1887_s13, %s1886_s12  }
  0x54   : > { %s202_s11 = scalar_lea.vmem [#allocation5], %s1442_s6  ;;  %s198_s8 = sand.u32 1, %s1306_s18  }
  0x55   : > { %s209_s7 = sshll.u32 %s202_s11, 4  ;;  %s1496_s28 = scalar_lea.sflag [#allocation6], %s198_s8  ;;  %s1494_s7 = int_to_ptr.vmem [resolvable:$true] %s209_s7 }
  0x56   : > { %s1202_s26 = scalar_lea.hbm %s1459_s14, 4096  ;;  %s1207_s2 = scalar_lea.hbm %s1863_s1, 8192 }
  0x57   : > { %p1203_p5 = scmp.ne.s32.totalorder %s1459_s14, %s1202_s26  ;;  %p1208_p6 = scmp.lt.u32.totalorder %s1459_s14, %s1863_s1 }
  0x58   : > { %p1209_p8 = scmp.lt.u32.totalorder %s1207_s2, %s1202_s26  ;;  %p1211_p13 = scmp.lt.u32.totalorder %s1202_s26, %s1459_s14 }
  0x59   : > { %p1205_p2 = pnand %p1203_p5, %p1174_p0 }
  0x5a   : > { %p1210_p10 = por %p1209_p8, %p1208_p6 }
  0x5b   : > { %p1206_p4 = pneg %p1205_p2 }
  0x5c   : > { %p1212_p3 = por %p1211_p13, %p1210_p10 }
  0x5e   : > { %p1213_p7 = pnand %p1212_p3, %p1206_p4 }
  0x60   : > { %1216 = shalt.err (!%p1213_p7)
}
  0x61   : > { %s1217_s6 = scalar_lea.vmem %s1494_s7, 4096  ;;  %s1312_s25 = smov [#allocation5]  }
  0x62   : > { %p1218_p9 = scmp.ne.s32.totalorder %s1494_s7, %s1217_s6  ;;  %s1222_s29 = sshll.u32 %s1312_s25, 4  ;;  %s1223_s29 = int_to_ptr.vmem [resolvable:$false] %s1222_s29 }
  0x63   : > { %s1224_s0 = scalar_lea.vmem %s1223_s29, 8192  ;;  %p1225_p2 = scmp.lt.s32.totalorder %s1494_s7, %s1223_s29 }
  0x64   : > { %p1220_p1 = pnand %p1218_p9, %p1174_p0  ;;  %p1226_p6 = scmp.lt.s32.totalorder %s1224_s0, %s1217_s6 }
  0x66   : > { %p1221_p5 = pneg %p1220_p1  ;;  %p1227_p8 = por %p1226_p6, %p1225_p2 }
  0x68   : > { %p1228_p10 = pnand %p1227_p8, %p1221_p5 }
  0x6a   : > { %1231 = shalt.err (!%p1228_p10)
}
  0x6b   : > { %1009 = dma.hbm_to_vmem [thread:$0]  (!%p1450_p11), %s1459_s14, 4096, %s1494_s7, %s1496_s28, %s1887_s13, %s1887_s13, %s1886_s12  }
  0x6c   : > { %p1888_p0 = scmp.ne.s32.totalorder %s1878_s23, 0 }
  0x6d   : > { %s1528_s24 = sand.u32 (!%p1888_p0), 1, %s1298_s16   ;;  %p1889_p4 = scmp.ne.s32.totalorder (!%p1888_p0), %s1876_s21, 0 }
  0x6e   : > { %221 = sbr.rel (%p1888_p0) target bundleno = 464 (0x1d0), region = 36  ;;  %s1531_s20 = sshll.u32 (!%p1888_p0), %s1528_s24, 8 }
  0x6f   : > { %s224_s9 = scalar_lea.sflag (!%p1888_p0), [#allocation3], %s1528_s24  ;;  %s1535_s11 = scalar_lea.vmem (!%p1888_p0), [#allocation2], %s1531_s20 }
  0x75   : > { %1277 = dma.done.wait (%p1889_p4), %s224_s9, 4096  }
  0x76   : > { %1279 = vsyncadd (%p1889_p4), %s224_s9, 4294963200  ;;  %s232_s23 = sand.u32 1, %s1363_s19   ;;  %s1543_s12 = scalar_lea.vmem [#allocation5], %s1531_s20 }
  0x77   : > { %s233_s14 = scalar_lea.sflag [#allocation6], %s232_s23 }
  0x78   : > { %1281 = dma.done.wait (%p1889_p4), %s233_s14, 4096  }
  0x79   : > { %1283 = vsyncadd (%p1889_p4), %s233_s14, 4294963200  ;;  %p1890_p11 = scmp.eq.s32.totalorder %s1363_s19, 0 }
  0x7b   : > { %1285 = dma.done.wait (%p1890_p11), [#allocation6], 2048   ;;  %p1891_p13 = pmov %p1890_p11 }
  0x7c   : > { %v1313_v0 = vmov 0   ;;  %v1056_v1 = vld [vmem:[#allocation7 + $0x4] ss:$8 sps:$4 sm:$0xff]   ;;  %v1058_v2 = vld [vmem:[#allocation7] ss:$8 sps:$4 sm:$0xff]   ;;  %v276_v23 = vld [vmem:[%s1543_s12 + $0x10] sm:$0xff] }
  0x7d   : > { %1287 = vsyncadd (%p1891_p13), [#allocation6], 4294965248  ;;  %462 = vmatprep.mubr.bf16.mxu0 %v1313_v0  ;;  %542 = vmatprep.mubr.bf16.mxu1 %v1313_v0  ;;  %v1059_v3 = vld [vmem:[#allocation7 + $0x14] ss:$8 sps:$4 sm:$0xff]   ;;  %v1061_v4 = vld [vmem:[#allocation7 + $0x10] ss:$8 sps:$4 sm:$0xff]  }
  0x7e   : > { %430 = vmatprep.subr.bf16.mxu0 %v1056_v1  ;;  %973 = vmatprep.subr.bf16.mxu1 %v1056_v1  ;;  %v1062_v5 = vld [vmem:[#allocation7 + $0x24] ss:$8 sps:$4 sm:$0xff]   ;;  %v1064_v6 = vld [vmem:[#allocation7 + $0x20] ss:$8 sps:$4 sm:$0xff]   ;;  %v1065_v7 = vld [vmem:[#allocation7 + $0x34] ss:$8 sps:$4 sm:$0xff]  }
  0x7f   : > { %431 = vmatpush1.bf16.msra.mxu0 %v1058_v2  ;;  %981 = vmatpush1.bf16.msra.mxu1 %v1058_v2  ;;  %v1067_v8 = vld [vmem:[#allocation7 + $0x30] ss:$8 sps:$4 sm:$0xff]   ;;  %v1068_v9 = vld [vmem:[#allocation7 + $0x44] ss:$8 sps:$4 sm:$0xff]   ;;  %v1070_v10 = vld [vmem:[#allocation7 + $0x40] ss:$8 sps:$4 sm:$0xff]   ;;  %v340_v2 = vlaneseq }
  0x80   : > { %432 = vmatprep.subr.bf16.mxu0 %v1059_v3  ;;  %974 = vmatprep.subr.bf16.mxu1 %v1059_v3  ;;  %v1071_v11 = vld [vmem:[#allocation7 + $0x54] ss:$8 sps:$4 sm:$0xff]   ;;  %v1073_v12 = vld [vmem:[#allocation7 + $0x50] ss:$8 sps:$4 sm:$0xff]   ;;  %v1074_v13 = vld [vmem:[#allocation7 + $0x64] ss:$8 sps:$4 sm:$0xff]  }
  0x81   : > { %v1076_v14 = vld [vmem:[#allocation7 + $0x60] ss:$8 sps:$4 sm:$0xff]   ;;  %v1077_v15 = vld [vmem:[#allocation7 + $0x74] ss:$8 sps:$4 sm:$0xff]   ;;  %v1079_v16 = vld [vmem:[#allocation7 + $0x70] ss:$8 sps:$4 sm:$0xff]  }
  0x82   : > { %v274_v17 = vld [vmem:[%s1543_s12] sm:$0xff]  ;;  %v275_v18 = vld [vmem:[%s1543_s12 + $0x8] sm:$0xff]  ;;  %v277_v24 = vld [vmem:[%s1543_s12 + $0x18] sm:$0xff]  ;;  %v341_v3 = vshrl.u32 %v340_v2, 7  ;;  %s1643_s7 = scalar_lea.vmem [#allocation8], %s1531_s20  ;;  %s972_s8 = sshll.u32 %s1363_s19, 12 }
  0x83   : > { %433 = vmatpush1.bf16.msra.mxu0 %v1061_v4  ;;  %982 = vmatpush1.bf16.msra.mxu1 %v1061_v4  ;;  %v290_v19 = vld [vmem:[%s1543_s12 + $0x80] sm:$0xff]  ;;  %v291_v20 = vld [vmem:[%s1543_s12 + $0x88] sm:$0xff]  ;;  %v306_v21 = vpack.c.bf16 %v275_v18, %v274_v17  ;;  %v292_v25 = vld [vmem:[%s1543_s12 + $0x90] sm:$0xff]  ;;  %v307_v27 = vpack.c.bf16 %v277_v24, %v276_v23  ;;  %s829_s28 = sshll.u32 %s1643_s7, 4  ;;  %s1814_s10 = scalar_lea.hbm %s1866_s4, %s972_s8  ;;  %s1816_s28 = int_to_ptr.vmem [resolvable:$true] %s829_s28 }
  0x84   : > { %434 = vmatprep.subr.bf16.mxu0 %v1062_v5  ;;  %975 = vmatprep.subr.bf16.mxu1 %v1062_v5  ;;  %v314_v22 = vpack.c.bf16 %v291_v20, %v290_v19  ;;  %v293_v26 = vld [vmem:[%s1543_s12 + $0x98] sm:$0xff]  ;;  %v278_v29 = vld [vmem:[%s1543_s12 + $0x20] sm:$0xff]  ;;  %v279_v30 = vld [vmem:[%s1543_s12 + $0x28] sm:$0xff]  ;;  %v342_v4 = vsub.s32 0, %v341_v3  ;;  %s816_s19 = scalar_lea.sflag [#allocation4], %s1528_s24  ;;  %s1232_s2 = scalar_lea.vmem %s1816_s28, 4096 }
  0x85   : > { %v315_v28 = vpack.c.bf16 %v293_v26, %v292_v25  ;;  %v294_v31 = vld [vmem:[%s1543_s12 + $0xa0] sm:$0xff]  ;;  %v295_v32 = vld [vmem:[%s1543_s12 + $0xa8] sm:$0xff]  ;;  %v308_v33 = vpack.c.bf16 %v279_v30, %v278_v29  ;;  %v280_v35 = vld [vmem:[%s1543_s12 + $0x30] sm:$0xff]  ;;  %p1233_p3 = scmp.ne.s32.totalorder %s1816_s28, %s1232_s2  ;;  %s1314_s6 = smov [#allocation8]  }
  0x86   : > { %v316_v34 = vpack.c.bf16 %v295_v32, %v294_v31  ;;  %v281_v36 = vld [vmem:[%s1543_s12 + $0x38] sm:$0xff]  ;;  %v296_v37 = vld [vmem:[%s1543_s12 + $0xb0] sm:$0xff]  ;;  %v282_v41 = vld [vmem:[%s1543_s12 + $0x40] sm:$0xff]  ;;  %s1236_s25 = sshll.u32 %s1314_s6, 4  ;;  %s1237_s25 = int_to_ptr.vmem [resolvable:$false] %s1236_s25 }
  0x87   : > { %435 = vmatpush1.bf16.msra.mxu0 %v1064_v6  ;;  %983 = vmatpush1.bf16.msra.mxu1 %v1064_v6  ;;  %v297_v38 = vld [vmem:[%s1543_s12 + $0xb8] sm:$0xff]  ;;  %v309_v39 = vpack.c.bf16 %v281_v36, %v280_v35  ;;  %v283_v42 = vld [vmem:[%s1543_s12 + $0x48] sm:$0xff]  ;;  %v298_v43 = vld [vmem:[%s1543_s12 + $0xc0] sm:$0xff]  ;;  %p1234_p7 = pnand %p1233_p3, %p1436_p12  ;;  %s1238_s29 = scalar_lea.vmem %s1237_s25, 8192 }
  0x88   : > { %436 = vmatprep.subr.bf16.mxu0 %v1065_v7  ;;  %976 = vmatprep.subr.bf16.mxu1 %v1065_v7  ;;  %v317_v40 = vpack.c.bf16 %v297_v38, %v296_v37  ;;  %v299_v44 = vld [vmem:[%s1543_s12 + $0xc8] sm:$0xff]  ;;  %v310_v45 = vpack.c.bf16 %v283_v42, %v282_v41  ;;  %v284_v47 = vld [vmem:[%s1543_s12 + $0x50] sm:$0xff]  ;;  %v285_v48 = vld [vmem:[%s1543_s12 + $0x58] sm:$0xff]  ;;  %p1239_p1 = scmp.lt.s32.totalorder %s1816_s28, %s1237_s25  ;;  %p1240_p5 = scmp.lt.s32.totalorder %s1238_s29, %s1232_s2 }
  0x89   : > { %v318_v46 = vpack.c.bf16 %v299_v44, %v298_v43  ;;  %v300_v49 = vld [vmem:[%s1543_s12 + $0xd0] sm:$0xff]  ;;  %v301_v50 = vld [vmem:[%s1543_s12 + $0xd8] sm:$0xff]  ;;  %v311_v51 = vpack.c.bf16 %v285_v48, %v284_v47  ;;  %v286_v53 = vld [vmem:[%s1543_s12 + $0x60] sm:$0xff]  ;;  %p1235_p9 = pneg %p1234_p7 }
  0x8a   : > { %v319_v52 = vpack.c.bf16 %v301_v50, %v300_v49  ;;  %v287_v54 = vld [vmem:[%s1543_s12 + $0x68] sm:$0xff]  ;;  %v302_v55 = vld [vmem:[%s1543_s12 + $0xe0] sm:$0xff]  ;;  %v288_v59 = vld [vmem:[%s1543_s12 + $0x70] sm:$0xff]  ;;  %p1241_p2 = por %p1240_p5, %p1239_p1 }
  0x8b   : > { %437 = vmatpush1.bf16.msra.mxu0 %v1067_v8  ;;  %984 = vmatpush1.bf16.msra.mxu1 %v1067_v8  ;;  %v303_v56 = vld [vmem:[%s1543_s12 + $0xe8] sm:$0xff]  ;;  %v312_v57 = vpack.c.bf16 %v287_v54, %v286_v53  ;;  %v289_v60 = vld [vmem:[%s1543_s12 + $0x78] sm:$0xff]  ;;  %v304_v61 = vld [vmem:[%s1543_s12 + $0xf0] sm:$0xff] }
  0x8c   : > { %438 = vmatprep.subr.bf16.mxu0 %v1068_v9  ;;  %977 = vmatprep.subr.bf16.mxu1 %v1068_v9  ;;  %v320_v58 = vpack.c.bf16 %v303_v56, %v302_v55  ;;  %v305_v62 = vld [vmem:[%s1543_s12 + $0xf8] sm:$0xff]  ;;  %v313_v63 = vpack.c.bf16 %v289_v60, %v288_v59  ;;  %v338_v5 = vld [vmem:[%s1865_s3] sm:$0x3]  ;;  %v624_v43 = vld [vmem:[%s1535_s11 + $0x8] sm:$0xff]  ;;  %p1242_p6 = pnand %p1241_p2, %p1235_p9 }
  0x8d   : > { %v321_v1 = vpack.c.bf16 %v305_v62, %v304_v61  ;;  %v1604_v6 = vrot.slane %v338_v5, %v342_v4  ;;  %v623_v38 = vld [vmem:[%s1535_s11] sm:$0xff]  ;;  %v640_v47 = vld [vmem:[%s1535_s11 + $0x88] sm:$0xff] }
  0x8e   : > { %v639_v41 = vld [vmem:[%s1535_s11 + $0x80] sm:$0xff] }
  0x8f   : > { %439 = vmatpush1.bf16.msra.mxu0 %v1070_v10  ;;  %985 = vmatpush1.bf16.msra.mxu1 %v1070_v10 }
  0x90   : > { %440 = vmatprep.subr.bf16.mxu0 %v1071_v11  ;;  %978 = vmatprep.subr.bf16.mxu1 %v1071_v11 }
  0x93   : > { %441 = vmatpush1.bf16.msra.mxu0 %v1073_v12  ;;  %986 = vmatpush1.bf16.msra.mxu1 %v1073_v12 }
  0x94   : > { %442 = vmatprep.subr.bf16.mxu0 %v1074_v13  ;;  %979 = vmatprep.subr.bf16.mxu1 %v1074_v13 }
  0x97   : > { %443 = vmatpush1.bf16.msra.mxu0 %v1076_v14  ;;  %987 = vmatpush1.bf16.msra.mxu1 %v1076_v14 }
  0x98   : > { %444 = vmatprep.subr.bf16.mxu0 %v1077_v15  ;;  %980 = vmatprep.subr.bf16.mxu1 %v1077_v15 }
  0x9b   : > { %445 = vmatpush1.bf16.msra.mxu0 %v1079_v16  ;;  %988 = vmatpush1.bf16.msra.mxu1 %v1079_v16 }
  0x9e   : > { %463 = vmatmul.mubr.bf16.vlgmr.msra.gmra.mrb[0].mxu0 %v306_v21  ;;  %543 = vmatmul.mubr.bf16.vlgmr.msra.gmra.mrb[0].mxu1 %v314_v22  ;;  %v346_v22 = vsub.s32 1, %v341_v3 }
  0x9f   : > { %472 = vmatprep.mubr.bf16.mxu0 %v1313_v0  ;;  %552 = vmatprep.mubr.bf16.mxu1 %v1313_v0 }
  0xa0   : > { %v1622_v37 = vrot.slane %v338_v5, %v346_v22 }
  0xa6   : > { %473 = vmatmul.mubr.bf16.gmra.mrb[4].mxu0 %v307_v27  ;;  %553 = vmatmul.mubr.bf16.gmra.mrb[4].mxu1 %v315_v28 }
  0xa7   : > { %482 = vmatprep.mubr.bf16.mxu0 %v1313_v0  ;;  %562 = vmatprep.mubr.bf16.mxu1 %v1313_v0 }
  0xae   : > { %483 = vmatmul.mubr.bf16.gmra.mrb[8].mxu0 %v308_v33  ;;  %563 = vmatmul.mubr.bf16.gmra.mrb[8].mxu1 %v316_v34 }
  0xaf   : > { %492 = vmatprep.mubr.bf16.mxu0 %v1313_v0  ;;  %572 = vmatprep.mubr.bf16.mxu1 %v1313_v0 }
  0xb6   : > { %493 = vmatmul.mubr.bf16.gmra.mrb[12].mxu0 %v309_v39  ;;  %573 = vmatmul.mubr.bf16.gmra.mrb[12].mxu1 %v317_v40 }
  0xb7   : > { %502 = vmatprep.mubr.bf16.mxu0 %v1313_v0  ;;  %582 = vmatprep.mubr.bf16.mxu1 %v1313_v0 }
  0xbe   : > { %503 = vmatmul.mubr.bf16.gmra.mrb[16].mxu0 %v310_v45  ;;  %583 = vmatmul.mubr.bf16.gmra.mrb[16].mxu1 %v318_v46 }
  0xbf   : > { %512 = vmatprep.mubr.bf16.mxu0 %v1313_v0  ;;  %592 = vmatprep.mubr.bf16.mxu1 %v1313_v0 }
  0xc6   : > { %513 = vmatmul.mubr.bf16.gmra.mrb[20].mxu0 %v311_v51  ;;  %593 = vmatmul.mubr.bf16.gmra.mrb[20].mxu1 %v319_v52 }
  0xc7   : > { %522 = vmatprep.mubr.bf16.mxu0 %v1313_v0  ;;  %602 = vmatprep.mubr.bf16.mxu1 %v1313_v0 }
  0xce   : > { %523 = vmatmul.mubr.bf16.gmra.mrb[24].mxu0 %v312_v57  ;;  %603 = vmatmul.mubr.bf16.gmra.mrb[24].mxu1 %v320_v58 }
  0xcf   : > { %532 = vmatprep.mubr.bf16.mxu0 %v1313_v0  ;;  %612 = vmatprep.mubr.bf16.mxu1 %v1313_v0 }
  0xd6   : > { %533 = vmatmul.mubr.bf16.gmra.mrb[28].mxu0 %v313_v63  ;;  %613 = vmatmul.mubr.bf16.gmra.mrb[28].mxu1 %v321_v1 }
 0x171   : > { %v464_v7 = vpop.f32.mrb[0].mxu0  ;;  %v544_v8 = vpop.f32.mrb[0].mxu1 }
 0x172   : > { %v465_v0 = vadd.f32 %v464_v7, %v1604_v6  ;;  %v545_v9 = vadd.f32 %v544_v8, %v1604_v6  ;;  %v466_v10 = vpop.f32.mrb[1].mxu0  ;;  %v546_v11 = vpop.f32.mrb[1].mxu1 }
 0x173   : > { %v468_v12 = vpop.f32.mrb[2].mxu0  ;;  %v548_v13 = vpop.f32.mrb[2].mxu1  ;;  %v467_v45 = vadd.f32 %v466_v10, %v1622_v37  ;;  %v547_v51 = vadd.f32 %v546_v11, %v1622_v37  ;;  %v625_v11 = vld [vmem:[%s1535_s11 + $0x10] sm:$0xff] }
 0x174   : > { %v655_v14 = vmul.f32 1.442695, %v465_v0  ;;  %v687_v15 = vmul.f32 1.442695, %v545_v9  ;;  %v469_v16 = vadd.f32 %v468_v12, %v1604_v6  ;;  %v549_v17 = vadd.f32 %v548_v13, %v1604_v6  ;;  %v470_v18 = vpop.f32.mrb[3].mxu0  ;;  %v550_v19 = vpop.f32.mrb[3].mxu1 }
 0x175   : > { %v471_v59 = vadd.f32 %v470_v18, %v1622_v37  ;;  %v551_v61 = vadd.f32 %v550_v19, %v1622_v37  ;;  %v641_v12 = vld [vmem:[%s1535_s11 + $0x90] sm:$0xff] }
 0x176   : > { %1080 = vpow2.f32 %v655_v14  ;;  %v657_v20 = vmul.f32 1.442695, %v469_v16  ;;  %v689_v21 = vmul.f32 1.442695, %v549_v17  ;;  %v626_v16 = vld [vmem:[%s1535_s11 + $0x18] sm:$0xff] }
 0x177   : > { %1082 = vpow2.f32 %v687_v15 }
 0x178   : > { %1084 = vpow2.f32 %v657_v20 }
 0x179   : > { %1086 = vpow2.f32 %v689_v21  ;;  %v474_v23 = vpop.f32.mrb[4].mxu0  ;;  %v554_v24 = vpop.f32.mrb[4].mxu1  ;;  %v642_v21 = vld [vmem:[%s1535_s11 + $0x98] sm:$0xff] }
 0x17a   : > { %v475_v25 = vadd.f32 %v474_v23, %v1604_v6  ;;  %v555_v26 = vadd.f32 %v554_v24, %v1604_v6  ;;  %v1612_v27 = vpop.f32.mrb[5].mxu0  ;;  %v1614_v28 = vpop.f32.mrb[5].mxu1 }
 0x17b   : > { %v478_v29 = vpop.f32.mrb[6].mxu0  ;;  %v558_v30 = vpop.f32.mrb[6].mxu1  ;;  %v477_v18 = vadd.f32 %v1612_v27, %v1622_v37  ;;  %v557_v20 = vadd.f32 %v1614_v28, %v1622_v37 }
 0x17c   : > { %v659_v31 = vmul.f32 1.442695, %v475_v25  ;;  %v691_v32 = vmul.f32 1.442695, %v555_v26  ;;  %v479_v33 = vadd.f32 %v478_v29, %v1604_v6  ;;  %v559_v34 = vadd.f32 %v558_v30, %v1604_v6  ;;  %v1618_v35 = vpop.f32.mrb[7].mxu0  ;;  %v1620_v36 = vpop.f32.mrb[7].mxu1 }
 0x17d   : > { %v481_v28 = vadd.f32 %v1618_v35, %v1622_v37 }
 0x17e   : > { %1088 = vpow2.f32 %v659_v31  ;;  %v661_v39 = vmul.f32 1.442695, %v479_v33  ;;  %v693_v40 = vmul.f32 1.442695, %v559_v34  ;;  %v561_v34 = vadd.f32 %v1620_v36, %v1622_v37 }
 0x17f   : > { %1090 = vpow2.f32 %v691_v32 }
 0x180   : > { %v1081_v42 = vpop.eup %1080  ;;  %1092 = vpow2.f32 %v661_v39 }
 0x181   : > { %v1083_v44 = vpop.eup %1082  ;;  %v719_v46 = vmul.f32 %v1081_v42, %v623_v38  ;;  %1094 = vpow2.f32 %v693_v40  ;;  %v484_v48 = vpop.f32.mrb[8].mxu0 }
 0x182   : > { %v564_v49 = vpop.f32.mrb[8].mxu1  ;;  %v1085_v50 = vpop.eup %1084  ;;  %v735_v52 = vmul.f32 %v1083_v44, %v639_v41  ;;  %v485_v53 = vadd.f32 %v484_v48, %v1604_v6  ;;  %v627_v48 = vld [vmem:[%s1535_s11 + $0x20] sm:$0xff] }
 0x183   : > { %v565_v54 = vadd.f32 %v564_v49, %v1604_v6  ;;  %v1632_v55 = vpop.f32.mrb[9].mxu0  ;;  %v1634_v56 = vpop.f32.mrb[9].mxu1  ;;  %v751_v58 = vadd.f32 %v719_v46, %v467_v45  ;;  %v720_v60 = vmul.f32 %v1085_v50, %v624_v43  ;;  %v643_v49 = vld [vmem:[%s1535_s11 + $0xa0] sm:$0xff] }
 0x184   : > { %v1087_v57 = vpop.eup %1086  ;;  %v488_v62 = vpop.f32.mrb[10].mxu0  ;;  %v767_v1 = vadd.f32 %v735_v52, %v547_v51  ;;  %v663_v3 = vmul.f32 1.442695, %v485_v53 }
 0x185   : > { %v568_v63 = vpop.f32.mrb[10].mxu1  ;;  %v736_v2 = vmul.f32 %v1087_v57, %v640_v47  ;;  %v695_v4 = vmul.f32 1.442695, %v565_v54  ;;  %v1638_v5 = vpop.f32.mrb[11].mxu0  ;;  %783 = vst [vmem:[%s1643_s7] sm:$0xff] %v751_v58  ;;  %v752_v8 = vadd.f32 %v720_v60, %v471_v59  ;;  %v489_v0 = vadd.f32 %v488_v62, %v1604_v6  ;;  %v628_v59 = vld [vmem:[%s1535_s11 + $0x28] sm:$0xff] }
 0x186   : > { %v1640_v7 = vpop.f32.mrb[11].mxu1  ;;  %v569_v9 = vadd.f32 %v568_v63, %v1604_v6  ;;  %799 = vst [vmem:[%s1643_s7 + $0x80] sm:$0xff] %v767_v1  ;;  %1096 = vpow2.f32 %v663_v3  ;;  %v487_v54 = vadd.f32 %v1632_v55, %v1622_v37  ;;  %v567_v58 = vadd.f32 %v1634_v56, %v1622_v37  ;;  %v644_v63 = vld [vmem:[%s1535_s11 + $0xa8] sm:$0xff] }
 0x187   : > { %v768_v10 = vadd.f32 %v736_v2, %v551_v61  ;;  %784 = vst [vmem:[%s1643_s7 + $0x8] sm:$0xff] %v752_v8  ;;  %1098 = vpow2.f32 %v695_v4  ;;  %v665_v13 = vmul.f32 1.442695, %v489_v0  ;;  %v491_v56 = vadd.f32 %v1638_v5, %v1622_v37 }
 0x188   : > { %v697_v14 = vmul.f32 1.442695, %v569_v9  ;;  %v1089_v15 = vpop.eup %1088 }
 0x189   : > { %800 = vst [vmem:[%s1643_s7 + $0x88] sm:$0xff] %v768_v10  ;;  %v1091_v17 = vpop.eup %1090  ;;  %v721_v19 = vmul.f32 %v1089_v15, %v625_v11  ;;  %1100 = vpow2.f32 %v665_v13  ;;  %v494_v22 = vpop.f32.mrb[12].mxu0 }
 0x18a   : > { %v574_v23 = vpop.f32.mrb[12].mxu1  ;;  %v1093_v24 = vpop.eup %1092  ;;  %v737_v25 = vmul.f32 %v1091_v17, %v641_v12  ;;  %1102 = vpow2.f32 %v697_v14  ;;  %v495_v26 = vadd.f32 %v494_v22, %v1604_v6  ;;  %v571_v17 = vadd.f32 %v1640_v7, %v1622_v37 }
 0x18b   : > { %v575_v29 = vadd.f32 %v574_v23, %v1604_v6  ;;  %v1661_v30 = vpop.f32.mrb[13].mxu0  ;;  %v1663_v31 = vpop.f32.mrb[13].mxu1  ;;  %v753_v32 = vadd.f32 %v721_v19, %v477_v18  ;;  %v722_v33 = vmul.f32 %v1093_v24, %v626_v16  ;;  %v645_v23 = vld [vmem:[%s1535_s11 + $0xb0] sm:$0xff] }
 0x18c   : > { %v1095_v27 = vpop.eup %1094  ;;  %v498_v38 = vpop.f32.mrb[14].mxu0  ;;  %v769_v40 = vadd.f32 %v737_v25, %v557_v20  ;;  %v667_v42 = vmul.f32 1.442695, %v495_v26 }
 0x18d   : > { %v578_v39 = vpop.f32.mrb[14].mxu1  ;;  %v738_v41 = vmul.f32 %v1095_v27, %v642_v21  ;;  %v699_v43 = vmul.f32 1.442695, %v575_v29  ;;  %v1669_v44 = vpop.f32.mrb[15].mxu0  ;;  %785 = vst [vmem:[%s1643_s7 + $0x10] sm:$0xff] %v753_v32  ;;  %v754_v35 = vadd.f32 %v722_v33, %v481_v28  ;;  %v499_v46 = vadd.f32 %v498_v38, %v1604_v6  ;;  %v629_v21 = vld [vmem:[%s1535_s11 + $0x30] sm:$0xff] }
 0x18e   : > { %v1671_v45 = vpop.f32.mrb[15].mxu1  ;;  %v579_v47 = vadd.f32 %v578_v39, %v1604_v6  ;;  %801 = vst [vmem:[%s1643_s7 + $0x90] sm:$0xff] %v769_v40  ;;  %1104 = vpow2.f32 %v667_v42  ;;  %v497_v29 = vadd.f32 %v1661_v30, %v1622_v37  ;;  %v577_v32 = vadd.f32 %v1663_v31, %v1622_v37  ;;  %v630_v28 = vld [vmem:[%s1535_s11 + $0x38] sm:$0xff] }
 0x18f   : > { %v770_v36 = vadd.f32 %v738_v41, %v561_v34  ;;  %786 = vst [vmem:[%s1643_s7 + $0x18] sm:$0xff] %v754_v35  ;;  %1106 = vpow2.f32 %v699_v43  ;;  %v669_v50 = vmul.f32 1.442695, %v499_v46  ;;  %v646_v39 = vld [vmem:[%s1535_s11 + $0xb8] sm:$0xff]  ;;  %v501_v31 = vadd.f32 %v1669_v44, %v1622_v37 }
 0x190   : > { %v701_v51 = vmul.f32 1.442695, %v579_v47  ;;  %v1097_v52 = vpop.eup %1096 }
 0x191   : > { %802 = vst [vmem:[%s1643_s7 + $0x98] sm:$0xff] %v770_v36  ;;  %v1099_v53 = vpop.eup %1098  ;;  %v723_v57 = vmul.f32 %v1097_v52, %v627_v48  ;;  %1108 = vpow2.f32 %v669_v50  ;;  %v504_v60 = vpop.f32.mrb[16].mxu0 }
 0x192   : > { %v584_v61 = vpop.f32.mrb[16].mxu1  ;;  %v739_v62 = vmul.f32 %v1099_v53, %v643_v49  ;;  %1110 = vpow2.f32 %v701_v51  ;;  %v505_v1 = vadd.f32 %v504_v60, %v1604_v6  ;;  %v1689_v3 = vpop.f32.mrb[17].mxu0  ;;  %v631_v60 = vld [vmem:[%s1535_s11 + $0x40] sm:$0xff] }
 0x193   : > { %v585_v2 = vadd.f32 %v584_v61, %v1604_v6  ;;  %v1691_v4 = vpop.f32.mrb[17].mxu1  ;;  %v1101_v55 = vpop.eup %1100  ;;  %v755_v8 = vadd.f32 %v723_v57, %v487_v54  ;;  %v581_v54 = vadd.f32 %v1671_v45, %v1622_v37 }
 0x194   : > { %v508_v0 = vpop.f32.mrb[18].mxu0  ;;  %v588_v9 = vpop.f32.mrb[18].mxu1  ;;  %v771_v11 = vadd.f32 %v739_v62, %v567_v58  ;;  %v724_v12 = vmul.f32 %v1101_v55, %v628_v59  ;;  %v671_v13 = vmul.f32 1.442695, %v505_v1  ;;  %v647_v62 = vld [vmem:[%s1535_s11 + $0xc0] sm:$0xff]  ;;  %v507_v55 = vadd.f32 %v1689_v3, %v1622_v37 }
 0x195   : > { %v1103_v10 = vpop.eup %1102  ;;  %v703_v14 = vmul.f32 1.442695, %v585_v2  ;;  %v1695_v15 = vpop.f32.mrb[19].mxu0  ;;  %787 = vst [vmem:[%s1643_s7 + $0x20] sm:$0xff] %v755_v8  ;;  %v509_v18 = vadd.f32 %v508_v0, %v1604_v6  ;;  %v589_v19 = vadd.f32 %v588_v9, %v1604_v6  ;;  %v632_v0 = vld [vmem:[%s1535_s11 + $0x48] sm:$0xff] }
 0x196   : > { %v1697_v16 = vpop.f32.mrb[19].mxu1  ;;  %v740_v5 = vmul.f32 %v1103_v10, %v644_v63  ;;  %803 = vst [vmem:[%s1643_s7 + $0xa0] sm:$0xff] %v771_v11  ;;  %v756_v20 = vadd.f32 %v724_v12, %v491_v56  ;;  %1112 = vpow2.f32 %v671_v13  ;;  %v587_v56 = vadd.f32 %v1691_v4, %v1622_v37  ;;  %v648_v12 = vld [vmem:[%s1535_s11 + $0xc8] sm:$0xff] }
 0x197   : > { %1114 = vpow2.f32 %v703_v14  ;;  %v673_v24 = vmul.f32 1.442695, %v509_v18  ;;  %v705_v25 = vmul.f32 1.442695, %v589_v19  ;;  %v511_v4 = vadd.f32 %v1695_v15, %v1622_v37 }
 0x198   : > { %v772_v22 = vadd.f32 %v740_v5, %v571_v17  ;;  %v1105_v26 = vpop.eup %1104  ;;  %788 = vst [vmem:[%s1643_s7 + $0x28] sm:$0xff] %v756_v20 }
 0x199   : > { %v1107_v7 = vpop.eup %1106  ;;  %v725_v27 = vmul.f32 %v1105_v26, %v629_v21  ;;  %1116 = vpow2.f32 %v673_v24  ;;  %v514_v33 = vpop.f32.mrb[20].mxu0 }
 0x19a   : > { %804 = vst [vmem:[%s1643_s7 + $0xa8] sm:$0xff] %v772_v22  ;;  %v594_v34 = vpop.f32.mrb[20].mxu1  ;;  %v741_v38 = vmul.f32 %v1107_v7, %v645_v23  ;;  %1118 = vpow2.f32 %v705_v25  ;;  %v515_v40 = vadd.f32 %v514_v33, %v1604_v6  ;;  %v1717_v42 = vpop.f32.mrb[21].mxu0  ;;  %v633_v33 = vld [vmem:[%s1535_s11 + $0x50] sm:$0xff] }
 0x19b   : > { %v595_v41 = vadd.f32 %v594_v34, %v1604_v6  ;;  %v1719_v43 = vpop.f32.mrb[21].mxu1  ;;  %v1109_v30 = vpop.eup %1108  ;;  %v757_v35 = vadd.f32 %v725_v27, %v497_v29  ;;  %v591_v29 = vadd.f32 %v1697_v16, %v1622_v37 }
 0x19c   : > { %v518_v46 = vpop.f32.mrb[22].mxu0  ;;  %v598_v47 = vpop.f32.mrb[22].mxu1  ;;  %v773_v48 = vadd.f32 %v741_v38, %v577_v32  ;;  %v726_v49 = vmul.f32 %v1109_v30, %v630_v28  ;;  %v675_v50 = vmul.f32 1.442695, %v515_v40  ;;  %v649_v38 = vld [vmem:[%s1535_s11 + $0xd0] sm:$0xff]  ;;  %v517_v30 = vadd.f32 %v1717_v42, %v1622_v37 }
 0x19d   : > { %v1111_v36 = vpop.eup %1110  ;;  %v707_v51 = vmul.f32 1.442695, %v595_v41  ;;  %v1723_v52 = vpop.f32.mrb[23].mxu0  ;;  %789 = vst [vmem:[%s1643_s7 + $0x30] sm:$0xff] %v757_v35  ;;  %v519_v57 = vadd.f32 %v518_v46, %v1604_v6  ;;  %v599_v58 = vadd.f32 %v598_v47, %v1604_v6  ;;  %v634_v46 = vld [vmem:[%s1535_s11 + $0x58] sm:$0xff] }
 0x19e   : > { %v1725_v53 = vpop.f32.mrb[23].mxu1  ;;  %v742_v44 = vmul.f32 %v1111_v36, %v646_v39  ;;  %805 = vst [vmem:[%s1643_s7 + $0xb0] sm:$0xff] %v773_v48  ;;  %v758_v59 = vadd.f32 %v726_v49, %v501_v31  ;;  %1120 = vpow2.f32 %v675_v50  ;;  %v597_v31 = vadd.f32 %v1719_v43, %v1622_v37  ;;  %v650_v49 = vld [vmem:[%s1535_s11 + $0xd8] sm:$0xff] }
 0x19f   : > { %1122 = vpow2.f32 %v707_v51  ;;  %v677_v63 = vmul.f32 1.442695, %v519_v57  ;;  %v709_v1 = vmul.f32 1.442695, %v599_v58  ;;  %v521_v43 = vadd.f32 %v1723_v52, %v1622_v37 }
 0x1a0   : > { %v774_v61 = vadd.f32 %v742_v44, %v581_v54  ;;  %v1113_v2 = vpop.eup %1112  ;;  %790 = vst [vmem:[%s1643_s7 + $0x38] sm:$0xff] %v758_v59 }
 0x1a1   : > { %v1115_v45 = vpop.eup %1114  ;;  %v727_v8 = vmul.f32 %v1113_v2, %v631_v60  ;;  %1124 = vpow2.f32 %v677_v63  ;;  %v524_v9 = vpop.f32.mrb[24].mxu0 }
 0x1a2   : > { %806 = vst [vmem:[%s1643_s7 + $0xb8] sm:$0xff] %v774_v61  ;;  %v604_v10 = vpop.f32.mrb[24].mxu1  ;;  %v743_v11 = vmul.f32 %v1115_v45, %v647_v62  ;;  %1126 = vpow2.f32 %v709_v1  ;;  %v525_v13 = vadd.f32 %v524_v9, %v1604_v6  ;;  %v1745_v17 = vpop.f32.mrb[25].mxu0  ;;  %v635_v9 = vld [vmem:[%s1535_s11 + $0x60] sm:$0xff] }
 0x1a3   : > { %v605_v14 = vadd.f32 %v604_v10, %v1604_v6  ;;  %v1747_v5 = vpop.f32.mrb[25].mxu1  ;;  %v1117_v3 = vpop.eup %1116  ;;  %v759_v18 = vadd.f32 %v727_v8, %v507_v55  ;;  %v601_v55 = vadd.f32 %v1725_v53, %v1622_v37 }
 0x1a4   : > { %v528_v19 = vpop.f32.mrb[26].mxu0  ;;  %v608_v20 = vpop.f32.mrb[26].mxu1  ;;  %v775_v22 = vadd.f32 %v743_v11, %v587_v56  ;;  %v728_v23 = vmul.f32 %v1117_v3, %v632_v0  ;;  %v679_v24 = vmul.f32 1.442695, %v525_v13  ;;  %v651_v11 = vld [vmem:[%s1535_s11 + $0xe0] sm:$0xff]  ;;  %v527_v3 = vadd.f32 %v1745_v17, %v1622_v37 }
 0x1a5   : > { %v1119_v21 = vpop.eup %1118  ;;  %v711_v25 = vmul.f32 1.442695, %v605_v14  ;;  %v1751_v26 = vpop.f32.mrb[27].mxu0  ;;  %791 = vst [vmem:[%s1643_s7 + $0x40] sm:$0xff] %v759_v18  ;;  %v529_v27 = vadd.f32 %v528_v19, %v1604_v6  ;;  %v609_v32 = vadd.f32 %v608_v20, %v1604_v6  ;;  %v636_v18 = vld [vmem:[%s1535_s11 + $0x68] sm:$0xff] }
 0x1a6   : > { %v1753_v7 = vpop.f32.mrb[27].mxu1  ;;  %v744_v15 = vmul.f32 %v1119_v21, %v648_v12  ;;  %807 = vst [vmem:[%s1643_s7 + $0xc0] sm:$0xff] %v775_v22  ;;  %v760_v28 = vadd.f32 %v728_v23, %v511_v4  ;;  %1128 = vpow2.f32 %v679_v24  ;;  %v607_v4 = vadd.f32 %v1747_v5, %v1622_v37  ;;  %v652_v20 = vld [vmem:[%s1535_s11 + $0xe8] sm:$0xff] }
 0x1a7   : > { %1130 = vpow2.f32 %v711_v25  ;;  %v681_v39 = vmul.f32 1.442695, %v529_v27  ;;  %v713_v40 = vmul.f32 1.442695, %v609_v32  ;;  %v531_v17 = vadd.f32 %v1751_v26, %v1622_v37  ;;  %v637_v27 = vld [vmem:[%s1535_s11 + $0x70] sm:$0xff] }
 0x1a8   : > { %v776_v34 = vadd.f32 %v744_v15, %v591_v29  ;;  %v1121_v41 = vpop.eup %1120  ;;  %792 = vst [vmem:[%s1643_s7 + $0x48] sm:$0xff] %v760_v28  ;;  %v611_v29 = vadd.f32 %v1753_v7, %v1622_v37  ;;  %v653_v28 = vld [vmem:[%s1535_s11 + $0xf0] sm:$0xff] }
 0x1a9   : > { %v1123_v16 = vpop.eup %1122  ;;  %v729_v35 = vmul.f32 %v1121_v41, %v633_v33  ;;  %1132 = vpow2.f32 %v681_v39  ;;  %v534_v47 = vpop.f32.mrb[28].mxu0  ;;  %v638_v39 = vld [vmem:[%s1535_s11 + $0x78] sm:$0xff] }
 0x1aa   : > { %808 = vst [vmem:[%s1643_s7 + $0xc8] sm:$0xff] %v776_v34  ;;  %v614_v36 = vpop.f32.mrb[28].mxu1  ;;  %v745_v48 = vmul.f32 %v1123_v16, %v649_v38  ;;  %1134 = vpow2.f32 %v713_v40  ;;  %v535_v50 = vadd.f32 %v534_v47, %v1604_v6  ;;  %v536_v54 = vpop.f32.mrb[29].mxu0  ;;  %v654_v41 = vld [vmem:[%s1535_s11 + $0xf8] sm:$0xff] }
 0x1ab   : > { %v615_v51 = vadd.f32 %v614_v36, %v1604_v6  ;;  %v616_v44 = vpop.f32.mrb[29].mxu1  ;;  %v1125_v57 = vpop.eup %1124  ;;  %v761_v42 = vadd.f32 %v729_v35, %v517_v30  ;;  %v537_v26 = vadd.f32 %v536_v54, %v1622_v37 }
 0x1ac   : > { %v538_v58 = vpop.f32.mrb[30].mxu0  ;;  %v618_v59 = vpop.f32.mrb[30].mxu1  ;;  %v777_v61 = vadd.f32 %v745_v48, %v597_v31  ;;  %v730_v62 = vmul.f32 %v1125_v57, %v634_v46  ;;  %v683_v63 = vmul.f32 1.442695, %v535_v50  ;;  %v617_v7 = vadd.f32 %v616_v44, %v1622_v37 }
 0x1ad   : > { %v1127_v60 = vpop.eup %1126  ;;  %v715_v1 = vmul.f32 1.442695, %v615_v51  ;;  %v540_v2 = vpop.f32.mrb[31].mxu0  ;;  %793 = vst [vmem:[%s1643_s7 + $0x50] sm:$0xff] %v761_v42  ;;  %v539_v52 = vadd.f32 %v538_v58, %v1604_v6  ;;  %v619_v56 = vadd.f32 %v618_v59, %v1604_v6 }
 0x1ae   : > { %v620_v45 = vpop.f32.mrb[31].mxu1  ;;  %v746_v8 = vmul.f32 %v1127_v60, %v650_v49  ;;  %809 = vst [vmem:[%s1643_s7 + $0xd0] sm:$0xff] %v777_v61  ;;  %v762_v0 = vadd.f32 %v730_v62, %v521_v43  ;;  %1136 = vpow2.f32 %v683_v63  ;;  %v541_v46 = vadd.f32 %v540_v2, %v1622_v37 }
 0x1af   : > { %1138 = vpow2.f32 %v715_v1  ;;  %v685_v12 = vmul.f32 1.442695, %v539_v52  ;;  %v717_v13 = vmul.f32 1.442695, %v619_v56  ;;  %v621_v36 = vadd.f32 %v620_v45, %v1622_v37 }
 0x1b0   : > { %v778_v10 = vadd.f32 %v746_v8, %v601_v55  ;;  %v1129_v14 = vpop.eup %1128  ;;  %794 = vst [vmem:[%s1643_s7 + $0x58] sm:$0xff] %v762_v0 }
 0x1b1   : > { %v1131_v53 = vpop.eup %1130  ;;  %v731_v6 = vmul.f32 %v1129_v14, %v635_v9  ;;  %1140 = vpow2.f32 %v685_v12 }
 0x1b2   : > { %810 = vst [vmem:[%s1643_s7 + $0xd8] sm:$0xff] %v778_v10  ;;  %v747_v19 = vmul.f32 %v1131_v53, %v651_v11  ;;  %1142 = vpow2.f32 %v717_v13 }
 0x1b3   : > { %v1133_v21 = vpop.eup %1132  ;;  %v763_v22 = vadd.f32 %v731_v6, %v527_v3 }
 0x1b4   : > { %v1135_v23 = vpop.eup %1134  ;;  %v779_v24 = vadd.f32 %v747_v19, %v607_v4  ;;  %v732_v25 = vmul.f32 %v1133_v21, %v636_v18 }
 0x1b5   : > { %795 = vst [vmem:[%s1643_s7 + $0x60] sm:$0xff] %v763_v22  ;;  %v748_v5 = vmul.f32 %v1135_v23, %v652_v20 }
 0x1b6   : > { %811 = vst [vmem:[%s1643_s7 + $0xe0] sm:$0xff] %v779_v24  ;;  %v764_v15 = vadd.f32 %v732_v25, %v531_v17 }
 0x1b7   : > { %v780_v32 = vadd.f32 %v748_v5, %v611_v29 }
 0x1b8   : > { %v1137_v33 = vpop.eup %1136  ;;  %796 = vst [vmem:[%s1643_s7 + $0x68] sm:$0xff] %v764_v15 }
 0x1b9   : > { %v1139_v34 = vpop.eup %1138  ;;  %812 = vst [vmem:[%s1643_s7 + $0xe8] sm:$0xff] %v780_v32  ;;  %v733_v38 = vmul.f32 %v1137_v33, %v637_v27 }
 0x1ba   : > { %v749_v40 = vmul.f32 %v1139_v34, %v653_v28 }
 0x1bb   : > { %v1141_v16 = vpop.eup %1140  ;;  %v765_v30 = vadd.f32 %v733_v38, %v537_v26 }
 0x1bc   : > { %v1143_v35 = vpop.eup %1142  ;;  %v781_v31 = vadd.f32 %v749_v40, %v617_v7  ;;  %v734_v47 = vmul.f32 %v1141_v16, %v638_v39 }
 0x1bd   : > { %797 = vst [vmem:[%s1643_s7 + $0x70] sm:$0xff] %v765_v30  ;;  %v750_v48 = vmul.f32 %v1143_v35, %v654_v41 }
 0x1be   : > { %813 = vst [vmem:[%s1643_s7 + $0xf0] sm:$0xff] %v781_v31  ;;  %v766_v49 = vadd.f32 %v734_v47, %v541_v46 }
 0x1bf   : > { %v782_v50 = vadd.f32 %v750_v48, %v621_v36 }
 0x1c0   : > { %798 = vst [vmem:[%s1643_s7 + $0x78] sm:$0xff] %v766_v49 }
 0x1c1   : > { %814 = vst [vmem:[%s1643_s7 + $0xf8] sm:$0xff] %v782_v50 }
 0x1c2   : > { %1245 = shalt.err (!%p1242_p6)
}
 0x1c3   : > { %s1246_s0 = scalar_lea.hbm %s1814_s10, 4096  ;;  %s1250_s11 = scalar_lea.hbm %s1866_s4, 8192 }
 0x1c4   : > { %p1247_p8 = scmp.ne.s32.totalorder %s1814_s10, %s1246_s0  ;;  %p1251_p4 = scmp.lt.u32.totalorder %s1814_s10, %s1866_s4 }
 0x1c5   : > { %p1252_p11 = scmp.lt.u32.totalorder %s1250_s11, %s1246_s0  ;;  %p1254_p3 = scmp.lt.u32.totalorder %s1246_s0, %s1814_s10 }
 0x1c6   : > { %p1248_p10 = pnand %p1247_p8, %p1436_p12 }
 0x1c7   : > { %p1253_p13 = por %p1252_p11, %p1251_p4 }
 0x1c8   : > { %p1249_p0 = pneg %p1248_p10 }
 0x1c9   : > { %p1255_p7 = por %p1254_p3, %p1253_p13 }
 0x1cb   : > { %p1256_p9 = pnand %p1255_p7, %p1249_p0 }
 0x1cd   : > { %1259 = shalt.err (!%p1256_p9)
}
 0x1ce   : > { %s1315_s12 = smov 128   ;;  %s1316_s21 = smov 8  }
 0x1cf   : > { %997 = dma.vmem_to_hbm [thread:$0]  (%p1436_p12), %s1816_s28, 4096, %s1814_s10, %s816_s19, %s1315_s12, %s1315_s12, %s1316_s21  }
 0x1d0 PF: > { %s844_s13 = sand.u32 1, %s1294_s15   ;;  %p1892_p1 = scmp.ne.s32.totalorder %s1877_s22, 0 }
 0x1d1   : > { %p1893_p5 = scmp.ge.s32.totalorder %s1306_s18, 2  ;;  %s845_s7 = scalar_lea.sflag [#allocation4], %s844_s13 }
 0x1d3   : > { %p1011_p2 = pnand %p1893_p5, %p1892_p1 }
 0x1d5   : > { %1289 = dma.done.wait (!%p1011_p2), %s845_s7, 4096  }
 0x1d6   : > { %1291 = vsyncadd (!%p1011_p2), %s845_s7, 4294963200  ;;  %s1894_s8 = sld [smem:[#allocation13_spill]]  ;;  %p20_p6 = scmp.ge.s32.totalorder %s1398_s27, 4  }
 0x1d7   : > { %s1895_s15 = smov %s1298_s16  ;;  %s1896_s16 = smov %s1302_s17 }
 0x1d8   : > { %s1898_s18 = smov %s1398_s27  ;;  %22 = sbr.rel (!%p20_p6) target bundleno = 10 (0xa), region = 98 }
 0x1dc   : > { %s1897_s17 = smov %s1894_s8 }
 0x1df   :  { %850 = vsyncpa [#allocation3], 1 }
 0x1e0   :  { %852 = vsyncpa [#allocation3 + $0x1], 1 }
 0x1e1   :  { %853 = vsyncpa [#allocation6], 1 }
 0x1e2   :  { %855 = vsyncpa [#allocation6 + $0x1], 1 }
 0x1e3   :  { %856 = vsyncpa [#allocation4], 1 }
 0x1e4   :  { %858 = vsyncpa [#allocation4 + $0x1], 1 }

</bundles_post_ra>
